<compile_context>
chip_gen: v7x
topology: tpu7x:2x2x1
jax: 0.10.0
libtpu: 0.0.40
codegen_flags: <defaults>
</compile_context>

<pallas_src>
import functools
import math

import jax
import jax.numpy as jnp
import numpy as np
from jax.experimental import pallas as pl
from jax.experimental.pallas import tpu as pltpu


_SQRT_2_OVER_PI = 0.7978845608028654
_HP = jax.lax.Precision.HIGHEST


def _gelu_tanh(x):
    # tanh-approximate GELU (<= ~3e-4 abs error vs erf-GELU); the
    # transcendental runs in the EUP slot instead of a long VALU polynomial.
    return 0.5 * x * (1.0 + jnp.tanh(_SQRT_2_OVER_PI * (x + 0.044715 * x * x * x)))


def _split_dot(a, b):
    """f32-accurate matmul on the MXU via the native 3-pass bf16 split.

    Error ~2^-18 relative regardless of the backend's default f32 matmul
    precision; the extra passes are free here (K, M <= 16, MXU otherwise idle).
    """
    a_hi = a.astype(jnp.bfloat16)
    b_hi = b.astype(jnp.bfloat16)
    a_lo = (a - a_hi.astype(jnp.float32)).astype(jnp.bfloat16)
    b_lo = (b - b_hi.astype(jnp.float32)).astype(jnp.bfloat16)
    mm = functools.partial(jnp.dot, preferred_element_type=jnp.float32)
    return mm(a_hi, b_hi) + mm(a_hi, b_lo) + mm(a_lo, b_hi)


# --------------------------------------------------------------------------
# Fused per-image MS_MSA block kernel: everything O(H*W), lane-dense.
# --------------------------------------------------------------------------
def _msab_block_kernel(x_ref, xo_ref, wt_ref, bias_ref, dw_ref, mask_ref,
                       out_ref, *, width):
    # x_ref   : (1, C,  HW)   current x (channel-major, flattened spatial)
    # xo_ref  : (1, C2, HW)   constant skip branch x_
    # wt_ref  : (1, 2*dout, C+C2) per-batch folded matrix
    #             rows [0, dout)      : attention-apply + proj
    #             rows [dout, 2*dout) : to_v + conv1d (input of pos_emb)
    # bias_ref: (2*dout, 1)   [bp ; bc]
    # dw_ref  : (2, dout, 9)  depthwise 3x3 taps, tap = (dy+1)*3 + (dx+1)
    # mask_ref: (9, HW)       0/1 border masks per tap
    # out_ref : (1, C, HW)    new x (block output + residual)
    x = x_ref[0].astype(jnp.float32)
    xo = xo_ref[0].astype(jnp.float32)
    wt = wt_ref[0]
    bias = bias_ref[...]
    dw = dw_ref[...]
    masks = mask_ref[...]

    c_x = x.shape[0]
    hw = x.shape[1]
    dout = dw.shape[1]

    # Folded channel contraction (MXU): (2*dout, cin) @ (cin, HW), lane-dense.
    y = _split_dot(wt[:, :c_x], x) + _split_dot(wt[:, c_x:], xo) + bias
    out_c = y[:dout, :]      # proj(attention(x))
    p0 = y[dout:, :]         # conv1d(to_v(x_in))

    # pos_emb: depthwise3x3 -> GELU(tanh) -> depthwise3x3 via lane rolls.
    def dwconv(t, taps):
        acc = jnp.zeros_like(t)
        tap = 0
        for dy in (-1, 0, 1):
            for dx in (-1, 0, 1):
                s = dy * width + dx        # neighbour offset in the flat axis
                shifted = t if s == 0 else pltpu.roll(t, shift=(-s) % hw, axis=1)
                acc = acc + (shifted * taps[:, tap:tap + 1]) * masks[tap:tap + 1, :]
                tap += 1
        return acc

    pos = dwconv(_gelu_tanh(dwconv(p0, dw[0])), dw[1])

    # out = proj(attention) + pos_emb(conv1d(v)) + residual
    out_ref[0] = (out_c + pos + x).astype(out_ref.dtype)


# --------------------------------------------------------------------------
# Plain-JAX glue: pooled q/k attention + algebraic weight folding (tiny).
# --------------------------------------------------------------------------
def _border_masks(H, W):
    """(9, H*W) 0/1 masks marking which rolled neighbours are in-bounds."""
    hs, ws = np.divmod(np.arange(H * W), W)
    m = []
    for dy in (-1, 0, 1):
        for dx in (-1, 0, 1):
            ok = (ws + dx >= 0) & (ws + dx < W) & (hs + dy >= 0) & (hs + dy < H)
            m.append(ok.astype(np.float32))
    return jnp.asarray(np.stack(m))


def _fold_attention(xf, xof, p, *, heads, ds, H, W):
    """Pooled q/k -> dxd softmax attention, folded with proj / to_v / conv1d
    into one per-batch (2*dim_out, cin) matrix.  All of this is
    O(HW/ds^2 + d^2) -- microscopic -- so it stays next to the pooling glue."""
    B, C, _ = xf.shape
    C2 = xof.shape[1]
    Hs, Ws = H // ds, W // ds
    dh = p["wq"].shape[1]
    d = dh // heads
    dout = p["wp"].shape[1]

    def pool(t, ch):
        return t.reshape(B, ch, Hs, ds, Ws, ds).mean(axis=(3, 5))

    xs = jnp.concatenate([pool(xf, C), pool(xof, C2)], axis=1)     # (B,cin,Hs,Ws)
    xs = xs.reshape(B, C + C2, Hs * Ws)                            # (B,cin,n_s)

    q = jnp.einsum("bcn,cd->bdn", xs, p["wq"], precision=_HP).reshape(B, heads, d, -1)
    k = jnp.einsum("bcn,cd->bdn", xs, p["wk"], precision=_HP).reshape(B, heads, d, -1)

    def l2n(t):
        n = jnp.sqrt(jnp.sum(t * t, axis=-1, keepdims=True))
        return t / jnp.maximum(n, 1e-12)

    attn = jnp.einsum("bhin,bhjn->bhij", l2n(k), l2n(q), precision=_HP)
    attn = jax.nn.softmax(attn * p["resc"][None], axis=-1)          # (B,h,d,d)

    # out_c fold:  x_in @ Wv @ blockdiag_h(attn_h^T @ Wp_h)
    wp_h = p["wp"].reshape(heads, d, dout)
    m = jnp.einsum("bhij,hio->bhjo", attn, wp_h, precision=_HP).reshape(B, dh, dout)
    a = jnp.einsum("cd,bdo->bco", p["wv"], m, precision=_HP)        # (B,cin,dout)
    # p0 fold (batch-invariant): x_in @ (Wv @ Wc)
    b0 = jnp.broadcast_to(p["w_p0"][None], a.shape)                 # (B,cin,dout)
    return jnp.concatenate([a, b0], axis=-1).transpose(0, 2, 1)     # (B,2*dout,cin)


def _msab_block_pallas(xf, xof, wt, bias, dw, masks, *, W):
    B, C, HW = xf.shape
    C2 = xof.shape[1]
    dout2 = wt.shape[1]
    dout = dout2 // 2
    kernel = functools.partial(_msab_block_kernel, width=W)
    return pl.pallas_call(
        kernel,
        grid=(B,),
        in_specs=[
            pl.BlockSpec((1, C, HW), lambda b: (b, 0, 0)),
            pl.BlockSpec((1, C2, HW), lambda b: (b, 0, 0)),
            pl.BlockSpec((1, dout2, C + C2), lambda b: (b, 0, 0)),
            pl.BlockSpec((dout2, 1), lambda b: (0, 0)),
            pl.BlockSpec((2, dout, 9), lambda b: (0, 0, 0)),
            pl.BlockSpec((9, HW), lambda b: (0, 0)),
        ],
        out_specs=pl.BlockSpec((1, C, HW), lambda b: (b, 0, 0)),
        out_shape=jax.ShapeDtypeStruct((B, C, HW), xf.dtype),
        compiler_params=pltpu.CompilerParams(dimension_semantics=("parallel",)),
    )(xf, xof, wt, bias, dw, masks)


def msab_forward(x, x_, blocks, *, heads, ds):
    """x: [B, C, H, W], x_: [B, C2, H, W] -> [B, C, H, W]  (MSAB.forward)."""
    B, C, H, W = x.shape
    C2 = x_.shape[1]
    xf = x.reshape(B, C, H * W).astype(jnp.float32)
    xof = x_.reshape(B, C2, H * W).astype(jnp.float32)
    masks = _border_masks(H, W)
    for p in blocks:
        wt = _fold_attention(xf, xof, p, heads=heads, ds=ds, H=H, W=W)
        xf = _msab_block_pallas(xf, xof, wt, p["bias"], p["dw"], masks, W=W)
    return xf.reshape(B, C, H, W)


# --------------------------------------------------------------------------
# Pure-JAX reference (mirrors the PyTorch module exactly: erf-GELU, HIGHEST)
# --------------------------------------------------------------------------
def msab_reference(x, x_, torch_blocks, *, heads, ds):
    xh = jnp.transpose(x, (0, 2, 3, 1)).astype(jnp.float32)
    xoh = jnp.transpose(x_, (0, 2, 3, 1)).astype(jnp.float32)
    B, H, W, _ = xh.shape
    for p in torch_blocks:
        x_in = jnp.concatenate([xh, xoh], axis=-1)
        cin = x_in.shape[-1]
        dh = p["wq_t"].shape[0]
        d = dh // heads
        dout = p["wp_t"].shape[0]

        xs = x_in.reshape(B, H // ds, ds, W // ds, ds, cin).mean(axis=(2, 4))
        xs = xs.reshape(B, -1, cin)
        q_inp = jnp.einsum("bnc,dc->bnd", xs, p["wq_t"], precision=_HP)
        k_inp = jnp.einsum("bnc,dc->bnd", xs, p["wk_t"], precision=_HP)
        v_inp = jnp.einsum("bnc,dc->bnd", x_in.reshape(B, H * W, cin),
                           p["wv_t"], precision=_HP)

        def to_hdn(t):
            return jnp.transpose(t.reshape(B, t.shape[1], heads, d), (0, 2, 3, 1))

        q, k, v = to_hdn(q_inp), to_hdn(k_inp), to_hdn(v_inp)

        def l2n(t):
            n = jnp.sqrt(jnp.sum(t * t, axis=-1, keepdims=True))
            return t / jnp.maximum(n, 1e-12)

        q, k = l2n(q), l2n(k)
        attn = jnp.einsum("bhin,bhjn->bhij", k, q, precision=_HP)
        attn = attn * p["rescale"][None]
        attn = jax.nn.softmax(attn, axis=-1)
        xatt = jnp.einsum("bhij,bhjn->bhin", attn, v, precision=_HP)
        xatt = jnp.transpose(xatt, (0, 3, 1, 2)).reshape(B, H * W, dh)
        out_c = (jnp.einsum("bnd,od->bno", xatt, p["wp_t"], precision=_HP)
                 + p["bp"]).reshape(B, H, W, dout)
        p0 = (jnp.einsum("bnd,od->bno", v_inp, p["wc1d"][:, :, 0], precision=_HP)
              + p["bc"]).reshape(B, H, W, dout)

        def dwconv(t, wdw):
            tp_ = jnp.pad(t, ((0, 0), (1, 1), (1, 1), (0, 0)))
            acc = jnp.zeros_like(t)
            for ky in range(3):
                for kx in range(3):
                    acc = acc + tp_[:, ky:ky + H, kx:kx + W, :] * \
                        wdw[:, 0, ky, kx][None, None, None, :]
            return acc

        out_p = dwconv(jax.nn.gelu(dwconv(p0, p["dw1_t"]), approximate=False),
                       p["dw2_t"])
        xh = out_c + out_p + xh
    return jnp.transpose(xh, (0, 3, 1, 2))


def _to_kernel_params(tp):
    """Convert torch-layout synthetic weights into kernel/glue layouts."""
    wv = tp["wv_t"].T                                    # (cin, dh)
    wp = tp["wp_t"].T                                    # (dh, dout)
    wc = tp["wc1d"][:, :, 0].T                           # (dh, dout)
    dout = wp.shape[1]
    return dict(
        wq=tp["wq_t"].T,                                 # (cin, dh)
        wk=tp["wk_t"].T,
        wv=wv,
        wp=wp,
        w_p0=jnp.dot(wv, wc, precision=_HP),             # (cin, dout), batch-invariant
        bias=jnp.concatenate([tp["bp"], tp["bc"]]).reshape(2 * dout, 1),
        dw=jnp.stack([tp["dw1_t"][:, 0].reshape(dout, 9),
                      tp["dw2_t"][:, 0].reshape(dout, 9)]),   # (2, dout, 9)
        resc=tp["rescale"],
    )


if __name__ == "__main__":
    B, C, H, W = 2, 4, 16, 16
    C2 = 4                      # channels of the x_ (skip) branch
    HEADS = 2
    DIM_HEAD = 8                # total q/k/v projection width (= heads * d)
    DIM_OUT = C                 # residual requires dim_out == C
    NUM_BLOCKS = 2
    DS = 2                      # group_idx < 4  ->  ds = 2
    CIN = C + C2

    key = jax.random.PRNGKey(0)
    kx, kxo, kp = jax.random.split(key, 3)
    x = jax.random.normal(kx, (B, C, H, W), jnp.float32)
    x_ = jax.random.normal(kxo, (B, C2, H, W), jnp.float32)

    torch_params = []
    for bk in jax.random.split(kp, NUM_BLOCKS):
        ks = jax.random.split(bk, 10)
        torch_params.append(dict(
            wq_t=jax.random.normal(ks[0], (DIM_HEAD, CIN)) / math.sqrt(CIN),
            wk_t=jax.random.normal(ks[1], (DIM_HEAD, CIN)) / math.sqrt(CIN),
            wv_t=jax.random.normal(ks[2], (DIM_HEAD, CIN)) / math.sqrt(CIN),
            rescale=1.0 + 0.1 * jax.random.normal(ks[3], (HEADS, 1, 1)),
            wp_t=jax.random.normal(ks[4], (DIM_OUT, DIM_HEAD)) / math.sqrt(DIM_HEAD),
            bp=0.1 * jax.random.normal(ks[5], (DIM_OUT,)),
            wc1d=jax.random.normal(ks[6], (DIM_OUT, DIM_HEAD, 1)) / math.sqrt(DIM_HEAD),
            bc=0.1 * jax.random.normal(ks[7], (DIM_OUT,)),
            dw1_t=jax.random.normal(ks[8], (DIM_OUT, 1, 3, 3)) / 3.0,
            dw2_t=jax.random.normal(ks[9], (DIM_OUT, 1, 3, 3)) / 3.0,
        ))
    kernel_params = [_to_kernel_params(tp) for tp in torch_params]

    fwd = jax.jit(functools.partial(msab_forward, heads=HEADS, ds=DS))
    out = jax.block_until_ready(fwd(x, x_, kernel_params))

    ref = msab_reference(x, x_, torch_params, heads=HEADS, ds=DS)

    assert out.shape == (B, C, H, W)
    err = float(jnp.max(jnp.abs(out - ref)))
    # Only approximation vs the exact-erf reference is the tanh-GELU
    # (<= ~3e-4 per application), amplified through the second depthwise conv
    # and the 2-block residual chain; the folded contraction uses the 3-pass
    # bf16 split so it is f32-accurate (~1e-6).
    assert err < 1e-2, f"max abs error {err}"
    print("KERNEL_OK")
</pallas_src>

<mosaic_0001>
module attributes {stable_mosaic.version = 11 : i64} {
  func.func @_msab_block_kernel(%arg0: i32, %arg1: memref<1x4x256xf32, #tpu.memory_space<vmem>>, %arg2: memref<1x4x256xf32, #tpu.memory_space<vmem>>, %arg3: memref<1x8x8xf32, #tpu.memory_space<vmem>>, %arg4: memref<8x1xf32, #tpu.memory_space<vmem>>, %arg5: memref<2x4x9xf32, #tpu.memory_space<vmem>>, %arg6: memref<9x256xf32, #tpu.memory_space<vmem>>, %arg7: memref<1x4x256xf32, #tpu.memory_space<vmem>>) attributes {dimension_semantics = [#tpu.dimension_semantics<parallel>], iteration_bounds = array<i64: 2>, scalar_prefetch = 0 : i64, scratch_operands = 0 : i64, tpu.core_type = #tpu.core_type<tc>, window_params = [{transform_indices = @transform_0, window_bounds = array<i64: 1, 4, 256>}, {transform_indices = @transform_1, window_bounds = array<i64: 1, 4, 256>}, {transform_indices = @transform_2, window_bounds = array<i64: 1, 8, 8>}, {pipeline_mode = #tpu.pipeline_mode<synchronous>, transform_indices = @transform_3, window_bounds = array<i64: 8, 1>}, {pipeline_mode = #tpu.pipeline_mode<synchronous>, transform_indices = @transform_4, window_bounds = array<i64: 2, 4, 9>}, {pipeline_mode = #tpu.pipeline_mode<synchronous>, transform_indices = @transform_5, window_bounds = array<i64: 9, 256>}, {transform_indices = @transform_6, window_bounds = array<i64: 1, 4, 256>}]} {
    %c0 = arith.constant 0 : index
    %c0_0 = arith.constant 0 : index
    %c0_1 = arith.constant 0 : index
    %0 = vector.load %arg1[%c0, %c0_0, %c0_1] : memref<1x4x256xf32, #tpu.memory_space<vmem>>, vector<1x4x256xf32>
    %1 = vector.shape_cast %0 : vector<1x4x256xf32> to vector<4x256xf32>
    %c0_2 = arith.constant 0 : index
    %c0_3 = arith.constant 0 : index
    %c0_4 = arith.constant 0 : index
    %2 = vector.load %arg2[%c0_2, %c0_3, %c0_4] : memref<1x4x256xf32, #tpu.memory_space<vmem>>, vector<1x4x256xf32>
    %3 = vector.shape_cast %2 : vector<1x4x256xf32> to vector<4x256xf32>
    %c0_5 = arith.constant 0 : index
    %c0_6 = arith.constant 0 : index
    %c0_7 = arith.constant 0 : index
    %4 = vector.load %arg3[%c0_5, %c0_6, %c0_7] : memref<1x8x8xf32, #tpu.memory_space<vmem>>, vector<1x8x8xf32>
    %5 = vector.shape_cast %4 : vector<1x8x8xf32> to vector<8x8xf32>
    %c0_8 = arith.constant 0 : index
    %c0_9 = arith.constant 0 : index
    %6 = vector.load %arg4[%c0_8, %c0_9] : memref<8x1xf32, #tpu.memory_space<vmem>>, vector<8x1xf32>
    %c0_10 = arith.constant 0 : index
    %c0_11 = arith.constant 0 : index
    %c0_12 = arith.constant 0 : index
    %7 = vector.load %arg5[%c0_10, %c0_11, %c0_12] : memref<2x4x9xf32, #tpu.memory_space<vmem>>, vector<2x4x9xf32>
    %c0_13 = arith.constant 0 : index
    %c0_14 = arith.constant 0 : index
    %8 = vector.load %arg6[%c0_13, %c0_14] : memref<9x256xf32, #tpu.memory_space<vmem>>, vector<9x256xf32>
    %9 = vector.extract_strided_slice %5 {offsets = [0, 0], sizes = [8, 4], strides = [1, 1]} : vector<8x8xf32> to vector<8x4xf32>
    %10 = arith.truncf %9 : vector<8x4xf32> to vector<8x4xbf16>
    %11 = arith.truncf %1 : vector<4x256xf32> to vector<4x256xbf16>
    %12 = arith.extf %10 : vector<8x4xbf16> to vector<8x4xf32>
    %13 = arith.subf %9, %12 : vector<8x4xf32>
    %14 = arith.truncf %13 : vector<8x4xf32> to vector<8x4xbf16>
    %15 = arith.extf %11 : vector<4x256xbf16> to vector<4x256xf32>
    %16 = arith.subf %1, %15 : vector<4x256xf32>
    %17 = arith.truncf %16 : vector<4x256xf32> to vector<4x256xbf16>
    %cst = arith.constant dense<0.000000e+00> : vector<8x256xf32>
    %18 = tpu.matmul %10, %11, %cst {dimension_numbers = #tpu.dot_dimension_numbers<[1], [0], [0], [1], [0, 0, 1, 1], [], []>} : vector<8x4xbf16>, vector<4x256xbf16>, vector<8x256xf32> -> vector<8x256xf32>
    %cst_15 = arith.constant dense<0.000000e+00> : vector<8x256xf32>
    %19 = tpu.matmul %10, %17, %cst_15 {dimension_numbers = #tpu.dot_dimension_numbers<[1], [0], [0], [1], [0, 0, 1, 1], [], []>} : vector<8x4xbf16>, vector<4x256xbf16>, vector<8x256xf32> -> vector<8x256xf32>
    %20 = arith.addf %18, %19 : vector<8x256xf32>
    %cst_16 = arith.constant dense<0.000000e+00> : vector<8x256xf32>
    %21 = tpu.matmul %14, %11, %cst_16 {dimension_numbers = #tpu.dot_dimension_numbers<[1], [0], [0], [1], [0, 0, 1, 1], [], []>} : vector<8x4xbf16>, vector<4x256xbf16>, vector<8x256xf32> -> vector<8x256xf32>
    %22 = arith.addf %20, %21 : vector<8x256xf32>
    %23 = vector.extract_strided_slice %5 {offsets = [0, 4], sizes = [8, 4], strides = [1, 1]} : vector<8x8xf32> to vector<8x4xf32>
    %24 = arith.truncf %23 : vector<8x4xf32> to vector<8x4xbf16>
    %25 = arith.truncf %3 : vector<4x256xf32> to vector<4x256xbf16>
    %26 = arith.extf %24 : vector<8x4xbf16> to vector<8x4xf32>
    %27 = arith.subf %23, %26 : vector<8x4xf32>
    %28 = arith.truncf %27 : vector<8x4xf32> to vector<8x4xbf16>
    %29 = arith.extf %25 : vector<4x256xbf16> to vector<4x256xf32>
    %30 = arith.subf %3, %29 : vector<4x256xf32>
    %31 = arith.truncf %30 : vector<4x256xf32> to vector<4x256xbf16>
    %cst_17 = arith.constant dense<0.000000e+00> : vector<8x256xf32>
    %32 = tpu.matmul %24, %25, %cst_17 {dimension_numbers = #tpu.dot_dimension_numbers<[1], [0], [0], [1], [0, 0, 1, 1], [], []>} : vector<8x4xbf16>, vector<4x256xbf16>, vector<8x256xf32> -> vector<8x256xf32>
    %cst_18 = arith.constant dense<0.000000e+00> : vector<8x256xf32>
    %33 = tpu.matmul %24, %31, %cst_18 {dimension_numbers = #tpu.dot_dimension_numbers<[1], [0], [0], [1], [0, 0, 1, 1], [], []>} : vector<8x4xbf16>, vector<4x256xbf16>, vector<8x256xf32> -> vector<8x256xf32>
    %34 = arith.addf %32, %33 : vector<8x256xf32>
    %cst_19 = arith.constant dense<0.000000e+00> : vector<8x256xf32>
    %35 = tpu.matmul %28, %25, %cst_19 {dimension_numbers = #tpu.dot_dimension_numbers<[1], [0], [0], [1], [0, 0, 1, 1], [], []>} : vector<8x4xbf16>, vector<4x256xbf16>, vector<8x256xf32> -> vector<8x256xf32>
    %36 = arith.addf %34, %35 : vector<8x256xf32>
    %37 = arith.addf %22, %36 : vector<8x256xf32>
    %38 = vector.broadcast %6 : vector<8x1xf32> to vector<8x256xf32>
    %39 = arith.addf %37, %38 : vector<8x256xf32>
    %40 = vector.extract_strided_slice %39 {offsets = [0, 0], sizes = [4, 256], strides = [1, 1]} : vector<8x256xf32> to vector<4x256xf32>
    %41 = vector.extract_strided_slice %39 {offsets = [4, 0], sizes = [4, 256], strides = [1, 1]} : vector<8x256xf32> to vector<4x256xf32>
    %42 = vector.extract_strided_slice %7 {offsets = [0, 0, 0], sizes = [1, 4, 9], strides = [1, 1, 1]} : vector<2x4x9xf32> to vector<1x4x9xf32>
    %43 = vector.shape_cast %42 : vector<1x4x9xf32> to vector<4x9xf32>
    %cst_20 = arith.constant 0.000000e+00 : f32
    %44 = vector.broadcast %cst_20 : f32 to vector<4x256xf32>
    %c17_i32 = arith.constant 17 : i32
    %45 = tpu.dynamic_rotate %41 by %c17_i32 dim 1 : vector<4x256xf32>, i32 -> vector<4x256xf32>
    %46 = vector.extract_strided_slice %43 {offsets = [0, 0], sizes = [4, 1], strides = [1, 1]} : vector<4x9xf32> to vector<4x1xf32>
    %47 = vector.broadcast %46 : vector<4x1xf32> to vector<4x256xf32>
    %48 = arith.mulf %45, %47 : vector<4x256xf32>
    %49 = vector.extract_strided_slice %8 {offsets = [0, 0], sizes = [1, 256], strides = [1, 1]} : vector<9x256xf32> to vector<1x256xf32>
    %50 = vector.broadcast %49 : vector<1x256xf32> to vector<4x256xf32>
    %51 = arith.mulf %48, %50 : vector<4x256xf32>
    %52 = arith.addf %44, %51 : vector<4x256xf32>
    %c16_i32 = arith.constant 16 : i32
    %53 = tpu.dynamic_rotate %41 by %c16_i32 dim 1 : vector<4x256xf32>, i32 -> vector<4x256xf32>
    %54 = vector.extract_strided_slice %43 {offsets = [0, 1], sizes = [4, 1], strides = [1, 1]} : vector<4x9xf32> to vector<4x1xf32>
    %55 = vector.broadcast %54 : vector<4x1xf32> to vector<4x256xf32>
    %56 = arith.mulf %53, %55 : vector<4x256xf32>
    %57 = vector.extract_strided_slice %8 {offsets = [1, 0], sizes = [1, 256], strides = [1, 1]} : vector<9x256xf32> to vector<1x256xf32>
    %58 = vector.broadcast %57 : vector<1x256xf32> to vector<4x256xf32>
    %59 = arith.mulf %56, %58 : vector<4x256xf32>
    %60 = arith.addf %52, %59 : vector<4x256xf32>
    %c15_i32 = arith.constant 15 : i32
    %61 = tpu.dynamic_rotate %41 by %c15_i32 dim 1 : vector<4x256xf32>, i32 -> vector<4x256xf32>
    %62 = vector.extract_strided_slice %43 {offsets = [0, 2], sizes = [4, 1], strides = [1, 1]} : vector<4x9xf32> to vector<4x1xf32>
    %63 = vector.broadcast %62 : vector<4x1xf32> to vector<4x256xf32>
    %64 = arith.mulf %61, %63 : vector<4x256xf32>
    %65 = vector.extract_strided_slice %8 {offsets = [2, 0], sizes = [1, 256], strides = [1, 1]} : vector<9x256xf32> to vector<1x256xf32>
    %66 = vector.broadcast %65 : vector<1x256xf32> to vector<4x256xf32>
    %67 = arith.mulf %64, %66 : vector<4x256xf32>
    %68 = arith.addf %60, %67 : vector<4x256xf32>
    %c1_i32 = arith.constant 1 : i32
    %69 = tpu.dynamic_rotate %41 by %c1_i32 dim 1 : vector<4x256xf32>, i32 -> vector<4x256xf32>
    %70 = vector.extract_strided_slice %43 {offsets = [0, 3], sizes = [4, 1], strides = [1, 1]} : vector<4x9xf32> to vector<4x1xf32>
    %71 = vector.broadcast %70 : vector<4x1xf32> to vector<4x256xf32>
    %72 = arith.mulf %69, %71 : vector<4x256xf32>
    %73 = vector.extract_strided_slice %8 {offsets = [3, 0], sizes = [1, 256], strides = [1, 1]} : vector<9x256xf32> to vector<1x256xf32>
    %74 = vector.broadcast %73 : vector<1x256xf32> to vector<4x256xf32>
    %75 = arith.mulf %72, %74 : vector<4x256xf32>
    %76 = arith.addf %68, %75 : vector<4x256xf32>
    %77 = vector.extract_strided_slice %43 {offsets = [0, 4], sizes = [4, 1], strides = [1, 1]} : vector<4x9xf32> to vector<4x1xf32>
    %78 = vector.broadcast %77 : vector<4x1xf32> to vector<4x256xf32>
    %79 = arith.mulf %41, %78 : vector<4x256xf32>
    %80 = vector.extract_strided_slice %8 {offsets = [4, 0], sizes = [1, 256], strides = [1, 1]} : vector<9x256xf32> to vector<1x256xf32>
    %81 = vector.broadcast %80 : vector<1x256xf32> to vector<4x256xf32>
    %82 = arith.mulf %79, %81 : vector<4x256xf32>
    %83 = arith.addf %76, %82 : vector<4x256xf32>
    %c255_i32 = arith.constant 255 : i32
    %84 = tpu.dynamic_rotate %41 by %c255_i32 dim 1 : vector<4x256xf32>, i32 -> vector<4x256xf32>
    %85 = vector.extract_strided_slice %43 {offsets = [0, 5], sizes = [4, 1], strides = [1, 1]} : vector<4x9xf32> to vector<4x1xf32>
    %86 = vector.broadcast %85 : vector<4x1xf32> to vector<4x256xf32>
    %87 = arith.mulf %84, %86 : vector<4x256xf32>
    %88 = vector.extract_strided_slice %8 {offsets = [5, 0], sizes = [1, 256], strides = [1, 1]} : vector<9x256xf32> to vector<1x256xf32>
    %89 = vector.broadcast %88 : vector<1x256xf32> to vector<4x256xf32>
    %90 = arith.mulf %87, %89 : vector<4x256xf32>
    %91 = arith.addf %83, %90 : vector<4x256xf32>
    %c241_i32 = arith.constant 241 : i32
    %92 = tpu.dynamic_rotate %41 by %c241_i32 dim 1 : vector<4x256xf32>, i32 -> vector<4x256xf32>
    %93 = vector.extract_strided_slice %43 {offsets = [0, 6], sizes = [4, 1], strides = [1, 1]} : vector<4x9xf32> to vector<4x1xf32>
    %94 = vector.broadcast %93 : vector<4x1xf32> to vector<4x256xf32>
    %95 = arith.mulf %92, %94 : vector<4x256xf32>
    %96 = vector.extract_strided_slice %8 {offsets = [6, 0], sizes = [1, 256], strides = [1, 1]} : vector<9x256xf32> to vector<1x256xf32>
    %97 = vector.broadcast %96 : vector<1x256xf32> to vector<4x256xf32>
    %98 = arith.mulf %95, %97 : vector<4x256xf32>
    %99 = arith.addf %91, %98 : vector<4x256xf32>
    %c240_i32 = arith.constant 240 : i32
    %100 = tpu.dynamic_rotate %41 by %c240_i32 dim 1 : vector<4x256xf32>, i32 -> vector<4x256xf32>
    %101 = vector.extract_strided_slice %43 {offsets = [0, 7], sizes = [4, 1], strides = [1, 1]} : vector<4x9xf32> to vector<4x1xf32>
    %102 = vector.broadcast %101 : vector<4x1xf32> to vector<4x256xf32>
    %103 = arith.mulf %100, %102 : vector<4x256xf32>
    %104 = vector.extract_strided_slice %8 {offsets = [7, 0], sizes = [1, 256], strides = [1, 1]} : vector<9x256xf32> to vector<1x256xf32>
    %105 = vector.broadcast %104 : vector<1x256xf32> to vector<4x256xf32>
    %106 = arith.mulf %103, %105 : vector<4x256xf32>
    %107 = arith.addf %99, %106 : vector<4x256xf32>
    %c239_i32 = arith.constant 239 : i32
    %108 = tpu.dynamic_rotate %41 by %c239_i32 dim 1 : vector<4x256xf32>, i32 -> vector<4x256xf32>
    %109 = vector.extract_strided_slice %43 {offsets = [0, 8], sizes = [4, 1], strides = [1, 1]} : vector<4x9xf32> to vector<4x1xf32>
    %110 = vector.broadcast %109 : vector<4x1xf32> to vector<4x256xf32>
    %111 = arith.mulf %108, %110 : vector<4x256xf32>
    %112 = vector.extract_strided_slice %8 {offsets = [8, 0], sizes = [1, 256], strides = [1, 1]} : vector<9x256xf32> to vector<1x256xf32>
    %113 = vector.broadcast %112 : vector<1x256xf32> to vector<4x256xf32>
    %114 = arith.mulf %111, %113 : vector<4x256xf32>
    %115 = arith.addf %107, %114 : vector<4x256xf32>
    %cst_21 = arith.constant 5.000000e-01 : f32
    %116 = vector.broadcast %cst_21 : f32 to vector<4x256xf32>
    %117 = arith.mulf %116, %115 : vector<4x256xf32>
    %cst_22 = arith.constant 4.471500e-02 : f32
    %118 = vector.broadcast %cst_22 : f32 to vector<4x256xf32>
    %119 = arith.mulf %118, %115 : vector<4x256xf32>
    %120 = arith.mulf %119, %115 : vector<4x256xf32>
    %121 = arith.mulf %120, %115 : vector<4x256xf32>
    %122 = arith.addf %115, %121 : vector<4x256xf32>
    %cst_23 = arith.constant 0.797884583 : f32
    %123 = vector.broadcast %cst_23 : f32 to vector<4x256xf32>
    %124 = arith.mulf %123, %122 : vector<4x256xf32>
    %125 = math.tanh %124 : vector<4x256xf32>
    %cst_24 = arith.constant 1.000000e+00 : f32
    %126 = vector.broadcast %cst_24 : f32 to vector<4x256xf32>
    %127 = arith.addf %126, %125 : vector<4x256xf32>
    %128 = arith.mulf %117, %127 : vector<4x256xf32>
    %129 = vector.extract_strided_slice %7 {offsets = [1, 0, 0], sizes = [1, 4, 9], strides = [1, 1, 1]} : vector<2x4x9xf32> to vector<1x4x9xf32>
    %130 = vector.shape_cast %129 : vector<1x4x9xf32> to vector<4x9xf32>
    %cst_25 = arith.constant 0.000000e+00 : f32
    %131 = vector.broadcast %cst_25 : f32 to vector<4x256xf32>
    %c17_i32_26 = arith.constant 17 : i32
    %132 = tpu.dynamic_rotate %128 by %c17_i32_26 dim 1 : vector<4x256xf32>, i32 -> vector<4x256xf32>
    %133 = vector.extract_strided_slice %130 {offsets = [0, 0], sizes = [4, 1], strides = [1, 1]} : vector<4x9xf32> to vector<4x1xf32>
    %134 = vector.broadcast %133 : vector<4x1xf32> to vector<4x256xf32>
    %135 = arith.mulf %132, %134 : vector<4x256xf32>
    %136 = vector.extract_strided_slice %8 {offsets = [0, 0], sizes = [1, 256], strides = [1, 1]} : vector<9x256xf32> to vector<1x256xf32>
    %137 = vector.broadcast %136 : vector<1x256xf32> to vector<4x256xf32>
    %138 = arith.mulf %135, %137 : vector<4x256xf32>
    %139 = arith.addf %131, %138 : vector<4x256xf32>
    %c16_i32_27 = arith.constant 16 : i32
    %140 = tpu.dynamic_rotate %128 by %c16_i32_27 dim 1 : vector<4x256xf32>, i32 -> vector<4x256xf32>
    %141 = vector.extract_strided_slice %130 {offsets = [0, 1], sizes = [4, 1], strides = [1, 1]} : vector<4x9xf32> to vector<4x1xf32>
    %142 = vector.broadcast %141 : vector<4x1xf32> to vector<4x256xf32>
    %143 = arith.mulf %140, %142 : vector<4x256xf32>
    %144 = vector.extract_strided_slice %8 {offsets = [1, 0], sizes = [1, 256], strides = [1, 1]} : vector<9x256xf32> to vector<1x256xf32>
    %145 = vector.broadcast %144 : vector<1x256xf32> to vector<4x256xf32>
    %146 = arith.mulf %143, %145 : vector<4x256xf32>
    %147 = arith.addf %139, %146 : vector<4x256xf32>
    %c15_i32_28 = arith.constant 15 : i32
    %148 = tpu.dynamic_rotate %128 by %c15_i32_28 dim 1 : vector<4x256xf32>, i32 -> vector<4x256xf32>
    %149 = vector.extract_strided_slice %130 {offsets = [0, 2], sizes = [4, 1], strides = [1, 1]} : vector<4x9xf32> to vector<4x1xf32>
    %150 = vector.broadcast %149 : vector<4x1xf32> to vector<4x256xf32>
    %151 = arith.mulf %148, %150 : vector<4x256xf32>
    %152 = vector.extract_strided_slice %8 {offsets = [2, 0], sizes = [1, 256], strides = [1, 1]} : vector<9x256xf32> to vector<1x256xf32>
    %153 = vector.broadcast %152 : vector<1x256xf32> to vector<4x256xf32>
    %154 = arith.mulf %151, %153 : vector<4x256xf32>
    %155 = arith.addf %147, %154 : vector<4x256xf32>
    %c1_i32_29 = arith.constant 1 : i32
    %156 = tpu.dynamic_rotate %128 by %c1_i32_29 dim 1 : vector<4x256xf32>, i32 -> vector<4x256xf32>
    %157 = vector.extract_strided_slice %130 {offsets = [0, 3], sizes = [4, 1], strides = [1, 1]} : vector<4x9xf32> to vector<4x1xf32>
    %158 = vector.broadcast %157 : vector<4x1xf32> to vector<4x256xf32>
    %159 = arith.mulf %156, %158 : vector<4x256xf32>
    %160 = vector.extract_strided_slice %8 {offsets = [3, 0], sizes = [1, 256], strides = [1, 1]} : vector<9x256xf32> to vector<1x256xf32>
    %161 = vector.broadcast %160 : vector<1x256xf32> to vector<4x256xf32>
    %162 = arith.mulf %159, %161 : vector<4x256xf32>
    %163 = arith.addf %155, %162 : vector<4x256xf32>
    %164 = vector.extract_strided_slice %130 {offsets = [0, 4], sizes = [4, 1], strides = [1, 1]} : vector<4x9xf32> to vector<4x1xf32>
    %165 = vector.broadcast %164 : vector<4x1xf32> to vector<4x256xf32>
    %166 = arith.mulf %128, %165 : vector<4x256xf32>
    %167 = vector.extract_strided_slice %8 {offsets = [4, 0], sizes = [1, 256], strides = [1, 1]} : vector<9x256xf32> to vector<1x256xf32>
    %168 = vector.broadcast %167 : vector<1x256xf32> to vector<4x256xf32>
    %169 = arith.mulf %166, %168 : vector<4x256xf32>
    %170 = arith.addf %163, %169 : vector<4x256xf32>
    %c255_i32_30 = arith.constant 255 : i32
    %171 = tpu.dynamic_rotate %128 by %c255_i32_30 dim 1 : vector<4x256xf32>, i32 -> vector<4x256xf32>
    %172 = vector.extract_strided_slice %130 {offsets = [0, 5], sizes = [4, 1], strides = [1, 1]} : vector<4x9xf32> to vector<4x1xf32>
    %173 = vector.broadcast %172 : vector<4x1xf32> to vector<4x256xf32>
    %174 = arith.mulf %171, %173 : vector<4x256xf32>
    %175 = vector.extract_strided_slice %8 {offsets = [5, 0], sizes = [1, 256], strides = [1, 1]} : vector<9x256xf32> to vector<1x256xf32>
    %176 = vector.broadcast %175 : vector<1x256xf32> to vector<4x256xf32>
    %177 = arith.mulf %174, %176 : vector<4x256xf32>
    %178 = arith.addf %170, %177 : vector<4x256xf32>
    %c241_i32_31 = arith.constant 241 : i32
    %179 = tpu.dynamic_rotate %128 by %c241_i32_31 dim 1 : vector<4x256xf32>, i32 -> vector<4x256xf32>
    %180 = vector.extract_strided_slice %130 {offsets = [0, 6], sizes = [4, 1], strides = [1, 1]} : vector<4x9xf32> to vector<4x1xf32>
    %181 = vector.broadcast %180 : vector<4x1xf32> to vector<4x256xf32>
    %182 = arith.mulf %179, %181 : vector<4x256xf32>
    %183 = vector.extract_strided_slice %8 {offsets = [6, 0], sizes = [1, 256], strides = [1, 1]} : vector<9x256xf32> to vector<1x256xf32>
    %184 = vector.broadcast %183 : vector<1x256xf32> to vector<4x256xf32>
    %185 = arith.mulf %182, %184 : vector<4x256xf32>
    %186 = arith.addf %178, %185 : vector<4x256xf32>
    %c240_i32_32 = arith.constant 240 : i32
    %187 = tpu.dynamic_rotate %128 by %c240_i32_32 dim 1 : vector<4x256xf32>, i32 -> vector<4x256xf32>
    %188 = vector.extract_strided_slice %130 {offsets = [0, 7], sizes = [4, 1], strides = [1, 1]} : vector<4x9xf32> to vector<4x1xf32>
    %189 = vector.broadcast %188 : vector<4x1xf32> to vector<4x256xf32>
    %190 = arith.mulf %187, %189 : vector<4x256xf32>
    %191 = vector.extract_strided_slice %8 {offsets = [7, 0], sizes = [1, 256], strides = [1, 1]} : vector<9x256xf32> to vector<1x256xf32>
    %192 = vector.broadcast %191 : vector<1x256xf32> to vector<4x256xf32>
    %193 = arith.mulf %190, %192 : vector<4x256xf32>
    %194 = arith.addf %186, %193 : vector<4x256xf32>
    %c239_i32_33 = arith.constant 239 : i32
    %195 = tpu.dynamic_rotate %128 by %c239_i32_33 dim 1 : vector<4x256xf32>, i32 -> vector<4x256xf32>
    %196 = vector.extract_strided_slice %130 {offsets = [0, 8], sizes = [4, 1], strides = [1, 1]} : vector<4x9xf32> to vector<4x1xf32>
    %197 = vector.broadcast %196 : vector<4x1xf32> to vector<4x256xf32>
    %198 = arith.mulf %195, %197 : vector<4x256xf32>
    %199 = vector.extract_strided_slice %8 {offsets = [8, 0], sizes = [1, 256], strides = [1, 1]} : vector<9x256xf32> to vector<1x256xf32>
    %200 = vector.broadcast %199 : vector<1x256xf32> to vector<4x256xf32>
    %201 = arith.mulf %198, %200 : vector<4x256xf32>
    %202 = arith.addf %194, %201 : vector<4x256xf32>
    %203 = arith.addf %40, %202 : vector<4x256xf32>
    %204 = arith.addf %203, %1 : vector<4x256xf32>
    %c0_34 = arith.constant 0 : index
    %c0_35 = arith.constant 0 : index
    %c0_36 = arith.constant 0 : index
    %205 = vector.load %arg7[%c0_34, %c0_35, %c0_36] : memref<1x4x256xf32, #tpu.memory_space<vmem>>, vector<1x4x256xf32>
    %206 = vector.shape_cast %205 : vector<1x4x256xf32> to vector<4x256xf32>
    %207 = vector.shape_cast %204 : vector<4x256xf32> to vector<1x4x256xf32>
    tpu.vector_store %arg7[%c0_34, %c0_35, %c0_36], %207 {strides = array<i32>} : memref<1x4x256xf32, #tpu.memory_space<vmem>>, vector<1x4x256xf32>,
    return
  }
  func.func @transform_0(%arg0: i32) -> (i32, i32, i32) {
    %c0_i32 = arith.constant 0 : i32
    %c0_i32_0 = arith.constant 0 : i32
    %c0_i32_1 = arith.constant 0 : i32
    return %arg0, %c0_i32, %c0_i32_0 : i32, i32, i32
  }
  func.func @transform_1(%arg0: i32) -> (i32, i32, i32) {
    %c0_i32 = arith.constant 0 : i32
    %c0_i32_0 = arith.constant 0 : i32
    %c0_i32_1 = arith.constant 0 : i32
    return %arg0, %c0_i32, %c0_i32_0 : i32, i32, i32
  }
  func.func @transform_2(%arg0: i32) -> (i32, i32, i32) {
    %c0_i32 = arith.constant 0 : i32
    %c0_i32_0 = arith.constant 0 : i32
    %c0_i32_1 = arith.constant 0 : i32
    return %arg0, %c0_i32, %c0_i32_0 : i32, i32, i32
  }
  func.func @transform_3(%arg0: i32) -> (i32, i32) {
    %c0_i32 = arith.constant 0 : i32
    %c0_i32_0 = arith.constant 0 : i32
    %c0_i32_1 = arith.constant 0 : i32
    return %c0_i32, %c0_i32_0 : i32, i32
  }
  func.func @transform_4(%arg0: i32) -> (i32, i32, i32) {
    %c0_i32 = arith.constant 0 : i32
    %c0_i32_0 = arith.constant 0 : i32
    %c0_i32_1 = arith.constant 0 : i32
    %c0_i32_2 = arith.constant 0 : i32
    return %c0_i32, %c0_i32_0, %c0_i32_1 : i32, i32, i32
  }
  func.func @transform_5(%arg0: i32) -> (i32, i32) {
    %c0_i32 = arith.constant 0 : i32
    %c0_i32_0 = arith.constant 0 : i32
    %c0_i32_1 = arith.constant 0 : i32
    return %c0_i32, %c0_i32_0 : i32, i32
  }
  func.func @transform_6(%arg0: i32) -> (i32, i32, i32) {
    %c0_i32 = arith.constant 0 : i32
    %c0_i32_0 = arith.constant 0 : i32
    %c0_i32_1 = arith.constant 0 : i32
    return %arg0, %c0_i32, %c0_i32_0 : i32, i32, i32
  }
}

</mosaic_0001>

<bundles_post_ra>
// kernel: msab_forward.2
= control target key start
LH: loop header
LB: loop body
LE: loop exit
PB: predicated region body
PF: predicated region fallthrough
CT: control target
= control target key end

     0   :  { %s1263_s21 = smov 0   ;;  %s1661_s0 = inlined_call_operand.vmem [shape: f32[2,4,256], index: 0, kind: input, shape index: {}]   ;;  %s1662_s1 = inlined_call_operand.vmem [shape: f32[2,4,256], index: 1, kind: input, shape index: {}]   ;;  %s1663_s2 = inlined_call_operand.vmem [shape: f32[2,8,8], index: 2, kind: input, shape index: {}]   ;;  %s1664_s3 = inlined_call_operand.vmem [shape: f32[8,1], index: 3, kind: input, shape index: {}]   ;;  %s1665_s4 = inlined_call_operand.vmem [shape: f32[2,4,9], index: 4, kind: input, shape index: {}]   ;;  %s1666_s5 = inlined_call_operand.vmem [shape: f32[9,256], index: 5, kind: input, shape index: {}]   ;;  %s1667_s6 = inlined_call_operand.vmem [shape: f32[2,4,256], index: 6, kind: output, shape index: {}]  }
   0x1 LB: > { %s1120_s22 = sadd.s32 4294967295, %s1208_s21   ;;  %p1124_p0 = scmp.ge.s32.totalorder %s1208_s21, 1  ;;  %s1208_s21 = sphi %s1263_s21, %s16_s21  }
   0x2   : > { %p231_p1 = scmp.lt.s32.totalorder %s1208_s21, 3 }
   0x4   : > { %p232_p2 = pnand %p1124_p0, %p231_p1 }
   0x5   : > { %p270_p3 = scmp.lt.s32.totalorder (!%p232_p2), %s1120_s22, 1  ;;  %v1210_v0 = vmov (!%p232_p2), 0   ;;  %v293_v1 = vld [vmem:[%s1664_s3] sm:$0xff] (!%p232_p2)  ;;  %v1211_v5 = vmov (!%p232_p2), 1   ;;  %vm325_vm0 = vcmask (!%p232_p2), 1041408   ;;  %s1212_s13 = smov (!%p232_p2), 124  }
   0x6   : > { %235 = sbr.rel (%p232_p2) target bundleno = 714 (0x2ca), region = 44  ;;  %364 = vmatprep.mubr.bf16.mxu0 (!%p232_p2), %v1210_v0  ;;  %411 = vmatprep.mubr.bf16.mxu1 (!%p232_p2), %v1210_v0  ;;  %v1296_v4 = vld [vmem:[%s1665_s4] sm:$0xf] (!%p232_p2)  ;;  %v1213_v23 = vmov (!%p232_p2), 2   ;;  %vm321_vm1 = vcmask (!%p232_p2), 31744   ;;  %v1214_v31 = vmov (!%p232_p2), 4  }
   0x7   : > { %1177 = vset.pattern.permute.xlu1 (!%p232_p2), %v1210_v0  ;;  %1178 = vset.pattern.permute.xlu0 (!%p232_p2), %v1211_v5  ;;  %v1215_v37 = vmov (!%p232_p2), 3   ;;  %v1216_v38 = vmov (!%p232_p2), 7   ;;  %v1217_v39 = vmov (!%p232_p2), 5   ;;  %v1218_v41 = vmov (!%p232_p2), 8   ;;  %s1220_s14 = smov (!%p232_p2), 16   ;;  %s1221_s15 = smov (!%p232_p2), 17  }
   0x8   : > { %636 = vperm.xlu1 (!%p232_p2), %1177, %v293_v1   ;;  %v1219_v42 = vmov (!%p232_p2), 6   ;;  %s1222_s16 = smov (!%p232_p2), 15   ;;  %s1223_s17 = smov (!%p232_p2), 1  }
   0x9   : > { %s1224_s18 = smov (!%p232_p2), 113   ;;  %s1225_s19 = smov (!%p232_p2), 127  }
   0xa   : > { %s1226_s20 = smov (!%p232_p2), 112  }
   0xc   : > { %658 = vperm.xlu1 (!%p232_p2), %1177, %v1296_v4  }
   0xd   : > { %s1669_s22 = smov (!%p270_p3, %s1120_s22), 1 }
   0xe   : > { %s1274_s23 = sshll.u32 %s1669_s22, 3  ;;  %s1227_s22 = smov 111  }
   0xf   : > { %s283_s28 = scalar_lea.vmem %s1663_s2, %s1274_s23  ;;  %s274_s7 = scalar_lea.vmem %s1661_s0, %s1274_s23 }
  0x10   : > { %v292_v2 = vld [vmem:[%s283_s28] sm:$0xff]  ;;  %s279_s10 = scalar_lea.vmem %s1662_s1, %s1274_s23  ;;  %1179 = vset.pattern.permute.xlu1 %v1213_v23  ;;  %s288_s12 = scalar_lea.vmem %s1667_s6, %s1274_s23 }
  0x11   : > { %v1287_v3 = vld [vmem:[%s274_s7] sm:$0xff]  ;;  %v300_v6 = vpack.c.bf16 %v292_v2, %v292_v2  ;;  %708 = vperm.xlu1 %1179, %v1296_v4  }
  0x12   : > { %v1301_v7 = vcombine.high %v1287_v3, %v1287_v3  ;;  %v304_v8 = vpack.c.bf16 %v1287_v3, %v1287_v3  ;;  %v291_v9 = vld [vmem:[%s279_s10] sm:$0xff] }
  0x13   : > { %v467_v10 = vcombine.high %v291_v9, %v291_v9  ;;  %v469_v11 = vpack.c.bf16 %v291_v9, %v291_v9  ;;  %484 = vrot.lane.b32.xlu0 %v300_v6, %s1212_s13  ;;  %v306_v12 = vunpack.c.l.bf16 %v300_v6 }
  0x14   : > { %v305_v13 = vpack.c.bf16 %v1301_v7, %v1301_v7  ;;  %v309_v14 = vunpack.c.l.bf16 %v304_v8  ;;  %v374_v15 = vsel %vm325_vm0, %v304_v8, 0 }
  0x15   : > { %v470_v16 = vpack.c.bf16 %v467_v10, %v467_v10  ;;  %v471_v17 = vunpack.c.l.bf16 %v469_v11  ;;  %v307_v18 = vsub.f32 %v292_v2, %v306_v12  ;;  %1180 = vset.pattern.permute.xlu1 %v1214_v31  ;;  %v537_v36 = vsel %vm325_vm0, %v469_v11, 0 }
  0x16   : > { %v310_v19 = vunpack.c.l.bf16 %v305_v13  ;;  %1134 = vmatprep.subr.msk.bf16.mxu1 %vm325_vm0, %v305_v13  ;;  %751 = vperm.xlu1 %1180, %v1296_v4  }
  0x17   : > { %380 = vmatpush1.bf16.msra.mxu1 %v374_v15  ;;  %v472_v20 = vunpack.c.l.bf16 %v470_v16  ;;  %v308_v21 = vpack.c.bf16 %v307_v18, %v307_v18 }
  0x18   : > { %v313_v22 = vcombine.low %v309_v14, %v310_v19 }
  0x19   : > { %v475_v24 = vcombine.low %v471_v17, %v472_v20  ;;  %584 = vrot.lane.b32.xlu0 %v308_v21, %s1212_s13 }
  0x1a   : > { %v315_v25 = vsub.f32 %v1287_v3, %v313_v22  ;;  %1135 = vmatmul.mubr.msk.bf16.vlgmr.msra.gmra.mrb[0].mxu1 %vm321_vm1, %v300_v6  ;;  %1184 = vset.pattern.permute.xlu1 %v1216_v38 }
  0x1b   : > { %v477_v26 = vsub.f32 %v291_v9, %v475_v24  ;;  %527 = vmatprep.mubr.bf16.mxu1 %v1210_v0  ;;  %833 = vperm.xlu1 %1184, %v1296_v4  }
  0x1c   : > { %v317_v27 = vcombine.high %v315_v25, %v315_v25  ;;  %v319_v28 = vpack.c.bf16 %v315_v25, %v315_v25 }
  0x1d   : > { %v479_v29 = vcombine.high %v477_v26, %v477_v26  ;;  %v481_v30 = vpack.c.bf16 %v477_v26, %v477_v26  ;;  %683 = vperm.xlu0 %1178, %v1296_v4  }
  0x1e   : > { %v320_v32 = vpack.c.bf16 %v317_v27, %v317_v27  ;;  %v327_v33 = vsel %vm325_vm0, %v319_v28, 0 }
  0x1f   : > { %v482_v34 = vpack.c.bf16 %v479_v29, %v479_v29  ;;  %v490_v35 = vsel %vm325_vm0, %v481_v30, 0  ;;  %1185 = vset.pattern.permute.xlu1 %v1218_v41 }
  0x20   : > { %1132 = vmatprep.subr.msk.bf16.mxu0 %vm325_vm0, %v320_v32  ;;  %858 = vperm.xlu1 %1185, %v1296_v4  }
  0x21   : > { %333 = vmatpush1.bf16.msra.mxu0 %v327_v33  ;;  %1138 = vmatprep.subr.msk.bf16.mxu1 %vm325_vm0, %v482_v34 }
  0x22   : > { %1136 = vmatprep.subr.msk.bf16.mxu0 %vm325_vm0, %v305_v13  ;;  %496 = vmatpush1.bf16.msra.mxu1 %v490_v35 }
  0x23   : > { %1142 = vmatprep.subr.msk.bf16.mxu1 %vm325_vm0, %v470_v16  ;;  %1181 = vset.pattern.permute.xlu0 %v1215_v37 }
  0x24   : > { %1133 = vmatmul.mubr.msk.bf16.vlgmr.msra.gmra.mrb[0].mxu0 %vm321_vm1, %v300_v6  ;;  %733 = vperm.xlu0 %1181, %v1296_v4  }
  0x25   : > { %424 = vmatpush1.bf16.msra.mxu0 %v374_v15  ;;  %455 = vmatprep.mubr.bf16.mxu0 %v1210_v0 }
  0x26   : > { %1140 = vmatprep.subr.msk.bf16.mxu0 %vm325_vm0, %v470_v16  ;;  %1187 = vset.pattern.permute.xlu1 %v1211_v5 }
  0x28   : > { %1182 = vset.pattern.permute.xlu0 %v1217_v39 }
  0x29   : > { %783 = vperm.xlu0 %1182, %v1296_v4  }
  0x2c   : > { %1137 = vmatmul.mubr.msk.bf16.vlgmr.msra.gmra.mrb[4].mxu0 %vm321_vm1, %v308_v21  ;;  %v295_v21 = vld [vmem:[%s1665_s4 + $0x4] sm:$0xf] }
  0x2d   : > { %543 = vmatpush1.bf16.msra.mxu0 %v537_v36  ;;  %574 = vmatprep.mubr.bf16.mxu0 %v1210_v0 }
  0x2e   : > { %1183 = vset.pattern.permute.xlu0 %v1219_v42 }
  0x2f   : > { %808 = vperm.xlu0 %1183, %v1296_v4  }
  0x33   : > { %1186 = vset.pattern.permute.xlu0 %v1210_v0 }
  0x85   : > { %v485_v40 = vpop.permute.xlu0 %484 }
  0x86   : > { %1139 = vmatmul.mubr.msk.bf16.vlgmr.msra.gmra.mrb[4].mxu1 %vm321_vm1, %v485_v40  ;;  %1141 = vmatmul.mubr.msk.bf16.vlgmr.msra.gmra.mrb[8].mxu0 %vm321_vm1, %v485_v40 }
  0x87   : > { %590 = vmatpush1.bf16.msra.mxu1 %v537_v36  ;;  %621 = vmatprep.mubr.bf16.mxu1 %v1210_v0  ;;  %v637_v15 = vpop.permute.xlu1 %636 }
  0x8b   : > { %v585_v43 = vpop.permute.xlu0 %584  ;;  %v659_v22 = vpop.permute.xlu1 %658 }
  0x8e   : > { %1143 = vmatmul.mubr.msk.bf16.vlgmr.msra.gmra.mrb[8].mxu1 %vm321_vm1, %v585_v43 }
  0x90   : > { %v1379_v24 = vpop.permute.xlu1 %708 }
  0x95   : > { %v752_v26 = vpop.permute.xlu1 %751 }
  0x9a   : > { %v1383_v28 = vpop.permute.xlu1 %833 }
  0x9c   : > { %v684_v25 = vpop.permute.xlu0 %683 }
  0x9f   : > { %v1387_v29 = vpop.permute.xlu1 %858 }
  0xa3   : > { %v1381_v27 = vpop.permute.xlu0 %733 }
  0xed   : > { %v413_v44 = vpop.f32.mrb[0].mxu1 }
  0xee   : > { %v415_v45 = vpop.f32.mrb[1].mxu1 }
  0xef   : > { %v417_v46 = vpop.f32.mrb[2].mxu1 }
  0xf0   : > { %v418_v47 = vpop.f32.mrb[3].mxu1 }
  0xf7   : > { %v366_v48 = vpop.f32.mrb[0].mxu0 }
  0xf8   : > { %v368_v49 = vpop.f32.mrb[1].mxu0  ;;  %v414_v50 = vadd.f32 %v413_v44, %v366_v48 }
  0xf9   : > { %v370_v51 = vpop.f32.mrb[2].mxu0  ;;  %v416_v52 = vadd.f32 %v415_v45, %v368_v49 }
  0xfa   : > { %v371_v53 = vpop.f32.mrb[3].mxu0 }
  0xff   : > { %v457_v54 = vpop.f32.mrb[4].mxu0 }
 0x100   : > { %v464_v55 = vadd.f32 %v457_v54, %v414_v50  ;;  %v459_v56 = vpop.f32.mrb[5].mxu0 }
 0x101   : > { %v465_v57 = vadd.f32 %v459_v56, %v416_v52  ;;  %v461_v58 = vpop.f32.mrb[6].mxu0 }
 0x102   : > { %v462_v59 = vpop.f32.mrb[7].mxu0 }
 0x159   : > { %v529_v60 = vpop.f32.mrb[4].mxu1  ;;  %v576_v61 = vpop.f32.mrb[8].mxu0 }
 0x15a   : > { %v577_v62 = vadd.f32 %v576_v61, %v529_v60  ;;  %v531_v63 = vpop.f32.mrb[5].mxu1  ;;  %v578_v0 = vpop.f32.mrb[9].mxu0 }
 0x15b   : > { %v579_v1 = vadd.f32 %v578_v0, %v531_v63  ;;  %v533_v2 = vpop.f32.mrb[6].mxu1  ;;  %v580_v4 = vpop.f32.mrb[10].mxu0 }
 0x15c   : > { %v534_v5 = vpop.f32.mrb[7].mxu1  ;;  %v581_v6 = vpop.f32.mrb[11].mxu0 }
 0x161   : > { %v623_v8 = vpop.f32.mrb[8].mxu1 }
 0x162   : > { %v630_v9 = vadd.f32 %v623_v8, %v577_v62  ;;  %v625_v10 = vpop.f32.mrb[9].mxu1 }
 0x163   : > { %v631_v11 = vadd.f32 %v625_v10, %v579_v1  ;;  %v627_v12 = vpop.f32.mrb[10].mxu1 }
 0x164   : > { %v632_v13 = vadd.f32 %v630_v9, %v464_v55  ;;  %v628_v14 = vpop.f32.mrb[11].mxu1 }
 0x165   : > { %v633_v16 = vadd.f32 %v631_v11, %v465_v57 }
 0x166   : > { %v1346_v17 = vadd.f32 %v637_v15, %v632_v13 }
 0x167   : > { %v1353_v19 = vadd.f32 %v637_v15, %v633_v16 }
 0x168   : > { %v643_v18 = vrot.slane %v1346_v17, 4 }
 0x169   : > { %v644_v20 = vrot.slane %v1353_v19, 4 }
 0x16a   : > { %675 = vrot.lane.b32.xlu0 %v643_v18, %s1220_s14  ;;  %647 = vrot.lane.b32.xlu1 %v643_v18, %s1221_s15 }
 0x16e   : > { %700 = vrot.lane.b32.xlu0 %v643_v18, %s1222_s16  ;;  %725 = vrot.lane.b32.xlu1 %v643_v18, %s1223_s17 }
 0x172   : > { %800 = vrot.lane.b32.xlu0 %v643_v18, %s1224_s18  ;;  %775 = vrot.lane.b32.xlu1 %v643_v18, %s1225_s19 }
 0x176   : > { %777 = vrot.lane.b32.xlu0 %v644_v20, %s1225_s19  ;;  %649 = vrot.lane.b32.xlu1 %v644_v20, %s1221_s15 }
 0x17a   : > { %825 = vrot.lane.b32.xlu0 %v643_v18, %s1226_s20  ;;  %677 = vrot.lane.b32.xlu1 %v644_v20, %s1220_s14 }
 0x17e   : > { %850 = vrot.lane.b32.xlu0 %v643_v18, %s1227_s22  ;;  %702 = vrot.lane.b32.xlu1 %v644_v20, %s1222_s16 }
 0x182   : > { %727 = vrot.lane.b32.xlu1 %v644_v20, %s1223_s17  ;;  %901 = vperm.xlu0 %1186, %v295_v21  }
 0x186   : > { %802 = vrot.lane.b32.xlu1 %v644_v20, %s1224_s18  ;;  %1189 = vset.pattern.permute.xlu0 %v1215_v37  ;;  %v753_v37 = vrot.slane %v752_v26, 4 }
 0x187   : > { %949 = vperm.xlu0 %1189, %v295_v21  }
 0x188   : > { %v755_v44 = vmul.f32 %v753_v37, %v1346_v17  ;;  %v756_v50 = vmul.f32 %v753_v37, %v1353_v19 }
 0x18a   : > { %827 = vrot.lane.b32.xlu1 %v644_v20, %s1226_s20 }
 0x18b   : > { %1190 = vset.pattern.permute.xlu0 %v1214_v31  ;;  %v651_v31 = vlaneseq }
 0x18c   : > { %959 = vperm.xlu0 %1190, %v295_v21  }
 0x18d   : > { %v1391_v34 = vshrl.u32 %v651_v31, 7 }
 0x18e   : > { %852 = vrot.lane.b32.xlu1 %v644_v20, %s1227_s22 }
 0x18f   : > { %v759_v36 = vsub.s32 4, %v1391_v34  ;;  %v790_v45 = vsub.s32 5, %v1391_v34  ;;  %v690_v47 = vsub.s32 1, %v1391_v34  ;;  %v665_v53 = vsub.s32 0, %v1391_v34 }
 0x190   : > { %1191 = vset.pattern.permute.xlu0 %v1217_v39  ;;  %v715_v57 = vsub.s32 2, %v1391_v34  ;;  %v740_v58 = vsub.s32 3, %v1391_v34 }
 0x191   : > { %975 = vperm.xlu0 %1191, %v295_v21  }
 0x192   : > { %917 = vperm.xlu1 %1187, %v295_v21  }
 0x195   : > { %1192 = vset.pattern.permute.xlu0 %v1219_v42  ;;  %v1406_v42 = vld [vmem:[%s1666_s5 + $0x8] sm:$0xff] }
 0x196   : > { %1188 = vset.pattern.permute.xlu1 %v1213_v23  ;;  %991 = vperm.xlu0 %1192, %v295_v21   ;;  %v1385_v23 = vpop.permute.xlu0 %783  ;;  %v1415_v48 = vrot.slane %v1406_v42, %v759_v36  ;;  %v1431_v54 = vrot.slane %v1406_v42, %v790_v45  ;;  %v1447_v63 = vrot.slane %v1406_v42, %v690_v47 }
 0x197   : > { %933 = vperm.xlu1 %1188, %v295_v21   ;;  %v1456_v6 = vrot.slane %v1406_v42, %v665_v53  ;;  %v1462_v12 = vrot.slane %v1406_v42, %v715_v57 }
 0x198   : > { %v766_v2 = vmul.f32 %v1415_v48, %v756_v50 }
 0x19a   : > { %1195 = vset.pattern.permute.xlu0 %v1218_v41  ;;  %v1389_v30 = vpop.permute.xlu0 %808 }
 0x19b   : > { %1193 = vset.pattern.permute.xlu1 %v1216_v38  ;;  %v1399_v38 = vld [vmem:[%s1666_s5] sm:$0xff] }
 0x19c   : > { %1007 = vperm.xlu1 %1193, %v295_v21   ;;  %v1409_v43 = vrot.slane %v1399_v38, %v759_v36  ;;  %v1427_v52 = vrot.slane %v1399_v38, %v790_v45  ;;  %v1434_v55 = vrot.slane %v1399_v38, %v690_v47  ;;  %v1453_v5 = vrot.slane %v1399_v38, %v665_v53 }
 0x19d   : > { %v1459_v11 = vrot.slane %v1399_v38, %v715_v57  ;;  %v1470_v16 = vrot.slane %v1399_v38, %v740_v58 }
 0x19e   : > { %v1424_v51 = vmul.f32 %v1409_v43, %v755_v44  ;;  %v770_v44 = vrot.slane %v766_v2, 4 }
 0x1a0   : > { %1194 = vset.pattern.permute.xlu1 %v1218_v41  ;;  %v1401_v41 = vand.u32 127, %v651_v31  ;;  %v769_v4 = vrot.slane %v1424_v51, 4  ;;  %v1481_v31 = vrot.slane %v1406_v42, %v740_v58  ;;  %v840_v58 = vsub.s32 7, %v1391_v34 }
 0x1a1   : > { %1023 = vperm.xlu1 %1194, %v295_v21  }
 0x1a2   : > { %vm779_vm2 = vcmp.lt.s32.totalorder %v1401_v41, 127  ;;  %vm653_vm3 = vcmp.lt.s32.totalorder %v1401_v41, 17  ;;  %vm679_vm4 = vcmp.lt.s32.totalorder %v1401_v41, 16  ;;  %vm704_vm5 = vcmp.lt.s32.totalorder %v1401_v41, 15 }
 0x1a3   : > { %vm729_vm6 = vcmp.lt.s32.totalorder %v1401_v41, 1  ;;  %vm804_vm7 = vcmp.lt.s32.totalorder %v1401_v41, 113  ;;  %vm829_vm8 = vcmp.lt.s32.totalorder %v1401_v41, 112  ;;  %vm854_vm9 = vcmp.lt.s32.totalorder %v1401_v41, 111 }
 0x1dc   : > { %v648_v32 = vpop.permute.xlu1 %647  ;;  %v676_v33 = vpop.permute.xlu0 %675 }
 0x1e0   : > { %v1393_v35 = vpop.permute.xlu1 %725  ;;  %v701_v39 = vpop.permute.xlu0 %700 }
 0x1e4   : > { %v776_v40 = vpop.permute.xlu1 %775  ;;  %v1417_v49 = vpop.permute.xlu0 %800 }
 0x1e8   : > { %v650_v46 = vpop.permute.xlu1 %649  ;;  %v778_v8 = vpop.permute.xlu0 %777 }
 0x1e9   : > { %v654_v59 = vsel %vm653_vm3, %v648_v32, %v650_v46  ;;  %v655_v60 = vsel %vm653_vm3, %v650_v46, %v648_v32  ;;  %v781_v26 = vsel %vm779_vm2, %v778_v8, %v776_v40  ;;  %v815_v32 = vsub.s32 6, %v1391_v34 }
 0x1ea   : > { %v661_v9 = vmul.f32 %v659_v22, %v655_v60  ;;  %v662_v10 = vmul.f32 %v659_v22, %v654_v59 }
 0x1eb   : > { %v1500_v57 = vrot.slane %v1399_v38, %v815_v32 }
 0x1ec   : > { %v678_v56 = vpop.permute.xlu1 %677  ;;  %v672_v36 = vmul.f32 %v1456_v6, %v662_v10  ;;  %v826_v34 = vpop.permute.xlu0 %825  ;;  %v1518_v10 = vrot.slane %v1399_v38, %v840_v58 }
 0x1ed   : > { %v680_v61 = vsel %vm679_vm4, %v676_v33, %v678_v56  ;;  %v681_v62 = vsel %vm679_vm4, %v678_v56, %v676_v33  ;;  %v671_v33 = vmul.f32 %v1453_v5, %v661_v9  ;;  %v787_v56 = vmul.f32 %v1385_v23, %v781_v26 }
 0x1ee   : > { %v686_v0 = vmul.f32 %v684_v25, %v681_v62  ;;  %v687_v1 = vmul.f32 %v684_v25, %v680_v61  ;;  %v780_v25 = vsel %vm779_vm2, %v776_v40, %v778_v8 }
 0x1ef   : > { %v786_v53 = vmul.f32 %v1385_v23, %v780_v25 }
 0x1f0   : > { %v703_v13 = vpop.permute.xlu1 %702  ;;  %v696_v18 = vmul.f32 %v1434_v55, %v686_v0  ;;  %v697_v20 = vmul.f32 %v1447_v63, %v687_v1  ;;  %v1506_v0 = vrot.slane %v1406_v42, %v815_v32 }
 0x1f1   : > { %v705_v14 = vsel %vm704_vm5, %v701_v39, %v703_v13  ;;  %v706_v15 = vsel %vm704_vm5, %v703_v13, %v701_v39  ;;  %v1521_v13 = vrot.slane %v1406_v42, %v840_v58 }
 0x1f2   : > { %v711_v21 = vmul.f32 %v1379_v24, %v706_v15  ;;  %v712_v22 = vmul.f32 %v1379_v24, %v705_v14  ;;  %v698_v46 = vadd.f32 %v696_v18, %v671_v33  ;;  %v699_v47 = vadd.f32 %v697_v20, %v672_v36  ;;  %v851_v33 = vpop.permute.xlu0 %850 }
 0x1f3   : > { %v796_v14 = vmul.f32 %v1427_v52, %v786_v53 }
 0x1f4   : > { %v721_v37 = vmul.f32 %v1459_v11, %v711_v21  ;;  %v722_v39 = vmul.f32 %v1462_v12, %v712_v22  ;;  %v728_v24 = vpop.permute.xlu1 %727 }
 0x1f5   : > { %v730_v45 = vsel %vm729_vm6, %v1393_v35, %v728_v24  ;;  %v731_v40 = vsel %vm729_vm6, %v728_v24, %v1393_v35 }
 0x1f6   : > { %v736_v50 = vmul.f32 %v1381_v27, %v731_v40  ;;  %v737_v51 = vmul.f32 %v1381_v27, %v730_v45  ;;  %v723_v59 = vadd.f32 %v721_v37, %v698_v46  ;;  %v724_v60 = vadd.f32 %v722_v39, %v699_v47  ;;  %v1544_v45 = vld [vmem:[%s1666_s5 + $0x18] ss:$0 sm:$0xff] }
 0x1f8   : > { %v746_v35 = vmul.f32 %v1470_v16, %v736_v50  ;;  %v747_v61 = vmul.f32 %v1481_v31, %v737_v51  ;;  %v803_v62 = vpop.permute.xlu1 %802 }
 0x1f9   : > { %v805_v27 = vsel %vm804_vm7, %v1417_v49, %v803_v62  ;;  %v806_v23 = vsel %vm804_vm7, %v803_v62, %v1417_v49  ;;  %v797_v49 = vmul.f32 %v1431_v54, %v787_v56 }
 0x1fa   : > { %v748_v1 = vadd.f32 %v746_v35, %v723_v59  ;;  %v749_v2 = vadd.f32 %v747_v61, %v724_v60  ;;  %v811_v8 = vmul.f32 %v1389_v30, %v805_v27  ;;  %v812_v9 = vmul.f32 %v1389_v30, %v806_v23 }
 0x1fc   : > { %v773_v15 = vadd.f32 %v769_v4, %v748_v1  ;;  %v774_v18 = vadd.f32 %v770_v44, %v749_v2  ;;  %v828_v20 = vpop.permute.xlu1 %827  ;;  %v821_v21 = vmul.f32 %v1500_v57, %v811_v8  ;;  %v822_v22 = vmul.f32 %v1506_v0, %v812_v9  ;;  %v1539_v44 = vld [vmem:[%s1666_s5 + $0x10] ss:$0 sm:$0xff] }
 0x1fd   : > { %v830_v30 = vsel %vm829_vm8, %v826_v34, %v828_v20  ;;  %v831_v38 = vsel %vm829_vm8, %v828_v20, %v826_v34 }
 0x1fe   : > { %v798_v42 = vadd.f32 %v796_v14, %v773_v15  ;;  %v799_v25 = vadd.f32 %v797_v49, %v774_v18  ;;  %v836_v26 = vmul.f32 %v1383_v28, %v830_v30  ;;  %v837_v32 = vmul.f32 %v1383_v28, %v831_v38 }
 0x200   : > { %v823_v4 = vadd.f32 %v821_v21, %v798_v42  ;;  %v824_v36 = vadd.f32 %v822_v22, %v799_v25  ;;  %v846_v37 = vmul.f32 %v1518_v10, %v836_v26  ;;  %v847_v39 = vmul.f32 %v1521_v13, %v837_v32  ;;  %v853_v24 = vpop.permute.xlu1 %852 }
 0x201   : > { %v855_v28 = vsel %vm854_vm9, %v851_v33, %v853_v24  ;;  %v856_v40 = vsel %vm854_vm9, %v853_v24, %v851_v33  ;;  %v902_v38 = vpop.permute.xlu0 %901 }
 0x202   : > { %v861_v46 = vmul.f32 %v1387_v29, %v855_v28  ;;  %v862_v47 = vmul.f32 %v1387_v29, %v856_v40  ;;  %v848_v50 = vadd.f32 %v846_v37, %v823_v4  ;;  %v849_v51 = vadd.f32 %v847_v39, %v824_v36 }
 0x204   : > { %v871_v53 = vmul.f32 %v1539_v44, %v861_v46  ;;  %v872_v56 = vmul.f32 %v1544_v45, %v862_v47 }
 0x206   : > { %v873_v58 = vadd.f32 %v871_v53, %v848_v50  ;;  %v874_v59 = vadd.f32 %v872_v56, %v849_v51  ;;  %v950_v25 = vpop.permute.xlu0 %949 }
 0x208   : > { %v877_v60 = vmul.f32 0.044715, %v873_v58  ;;  %v878_v35 = vmul.f32 0.044715, %v874_v59  ;;  %v875_v14 = vmul.f32 0.5, %v873_v58  ;;  %v876_v20 = vmul.f32 0.5, %v874_v59 }
 0x20a   : > { %v879_v61 = vmul.f32 %v877_v60, %v873_v58  ;;  %v880_v62 = vmul.f32 %v878_v35, %v874_v59 }
 0x20b   : > { %v960_v32 = vpop.permute.xlu0 %959 }
 0x20c   : > { %v881_v27 = vmul.f32 %v879_v61, %v873_v58  ;;  %v882_v23 = vmul.f32 %v880_v62, %v874_v59 }
 0x20e   : > { %v883_v34 = vadd.f32 %v881_v27, %v873_v58  ;;  %v884_v1 = vadd.f32 %v882_v23, %v874_v59 }
 0x210   : > { %v885_v2 = vmul.f32 0.7978846, %v883_v34  ;;  %v886_v8 = vmul.f32 0.7978846, %v884_v1  ;;  %v976_v4 = vpop.permute.xlu0 %975 }
 0x211   : > { %v918_v22 = vpop.permute.xlu1 %917 }
 0x212   : > { %1198 = vtanh.f32 %v885_v2 }
 0x213   : > { %1200 = vtanh.f32 %v886_v8 }
 0x215   : > { %v992_v39 = vpop.permute.xlu0 %991 }
 0x216   : > { %v934_v30 = vpop.permute.xlu1 %933 }
 0x21b   : > { %v1590_v42 = vpop.permute.xlu1 %1007 }
 0x21c   : > { %v1199_v29 = vpop.eup %1198 }
 0x21d   : > { %v1201_v9 = vpop.eup %1200  ;;  %v889_v49 = vadd.f32 1.0, %v1199_v29 }
 0x21e   : > { %v890_v15 = vadd.f32 1.0, %v1201_v9 }
 0x21f   : > { %v1554_v18 = vmul.f32 %v889_v49, %v875_v14 }
 0x220   : > { %v1560_v21 = vmul.f32 %v890_v15, %v876_v20  ;;  %v1592_v26 = vpop.permute.xlu1 %1023 }
 0x221   : > { %910 = vrot.lane.b32.xlu0 %v1554_v18, %s1220_s14  ;;  %893 = vrot.lane.b32.xlu1 %v1554_v18, %s1221_s15 }
 0x225   : > { %970 = vrot.lane.b32.xlu0 %v1560_v21, %s1225_s19  ;;  %895 = vrot.lane.b32.xlu1 %v1560_v21, %s1221_s15 }
 0x229   : > { %984 = vrot.lane.b32.xlu0 %v1554_v18, %s1224_s18  ;;  %912 = vrot.lane.b32.xlu1 %v1560_v21, %s1220_s14 }
 0x22d   : > { %1000 = vrot.lane.b32.xlu0 %v1554_v18, %s1226_s20  ;;  %926 = vrot.lane.b32.xlu1 %v1554_v18, %s1222_s16 }
 0x231   : > { %1016 = vrot.lane.b32.xlu0 %v1554_v18, %s1227_s22  ;;  %928 = vrot.lane.b32.xlu1 %v1560_v21, %s1222_s16 }
 0x235   : > { %942 = vrot.lane.b32.xlu1 %v1554_v18, %s1223_s17 }
 0x239   : > { %944 = vrot.lane.b32.xlu1 %v1560_v21, %s1223_s17 }
 0x23d   : > { %968 = vrot.lane.b32.xlu1 %v1554_v18, %s1225_s19 }
 0x241   : > { %986 = vrot.lane.b32.xlu1 %v1560_v21, %s1224_s18 }
 0x245   : > { %1002 = vrot.lane.b32.xlu1 %v1560_v21, %s1226_s20 }
 0x249   : > { %1018 = vrot.lane.b32.xlu1 %v1560_v21, %s1227_s22 }
 0x293   : > { %v894_v33 = vpop.permute.xlu1 %893  ;;  %v911_v28 = vpop.permute.xlu0 %910 }
 0x297   : > { %v896_v36 = vpop.permute.xlu1 %895  ;;  %v971_v62 = vpop.permute.xlu0 %970 }
 0x298   : > { %v897_v50 = vsel %vm653_vm3, %v894_v33, %v896_v36  ;;  %v898_v51 = vsel %vm653_vm3, %v896_v36, %v894_v33 }
 0x299   : > { %v904_v35 = vmul.f32 %v902_v38, %v898_v51  ;;  %v905_v61 = vmul.f32 %v902_v38, %v897_v50 }
 0x29b   : > { %v913_v37 = vpop.permute.xlu1 %912  ;;  %v906_v8 = vmul.f32 %v904_v35, %v1453_v5  ;;  %v907_v29 = vmul.f32 %v905_v61, %v1456_v6 }
 0x29c   : > { %v914_v46 = vsel %vm679_vm4, %v911_v28, %v913_v37  ;;  %v915_v47 = vsel %vm679_vm4, %v913_v37, %v911_v28 }
 0x29d   : > { %v920_v58 = vmul.f32 %v918_v22, %v915_v47  ;;  %v921_v59 = vmul.f32 %v918_v22, %v914_v46 }
 0x29f   : > { %v927_v24 = vpop.permute.xlu1 %926  ;;  %v922_v34 = vmul.f32 %v920_v58, %v1434_v55  ;;  %v923_v1 = vmul.f32 %v921_v59, %v1447_v63  ;;  %v985_v55 = vpop.permute.xlu0 %984 }
 0x2a1   : > { %v925_v63 = vadd.f32 %v923_v1, %v907_v29 }
 0x2a3   : > { %v929_v40 = vpop.permute.xlu1 %928 }
 0x2a4   : > { %v930_v53 = vsel %vm704_vm5, %v927_v24, %v929_v40  ;;  %v931_v56 = vsel %vm704_vm5, %v929_v40, %v927_v24 }
 0x2a5   : > { %v936_v27 = vmul.f32 %v934_v30, %v931_v56  ;;  %v937_v23 = vmul.f32 %v934_v30, %v930_v53  ;;  %v924_v30 = vadd.f32 %v922_v34, %v906_v8 }
 0x2a7   : > { %v943_v60 = vpop.permute.xlu1 %942  ;;  %v938_v49 = vmul.f32 %v936_v27, %v1459_v11  ;;  %v939_v15 = vmul.f32 %v937_v23, %v1462_v12  ;;  %v962_v11 = vmul.f32 %v960_v32, %v1554_v18  ;;  %v963_v12 = vmul.f32 %v960_v32, %v1560_v21  ;;  %v1001_v18 = vpop.permute.xlu0 %1000 }
 0x2a9   : > { %v940_v37 = vadd.f32 %v938_v49, %v924_v30  ;;  %v964_v50 = vmul.f32 %v962_v11, %v1409_v43  ;;  %v965_v51 = vmul.f32 %v963_v12, %v1415_v48 }
 0x2ab   : > { %v945_v2 = vpop.permute.xlu1 %944 }
 0x2ac   : > { %v946_v9 = vsel %vm729_vm6, %v943_v60, %v945_v2  ;;  %v947_v14 = vsel %vm729_vm6, %v945_v2, %v943_v60 }
 0x2ad   : > { %v952_v20 = vmul.f32 %v950_v25, %v947_v14  ;;  %v953_v22 = vmul.f32 %v950_v25, %v946_v9  ;;  %v941_v25 = vadd.f32 %v939_v15, %v925_v63 }
 0x2af   : > { %v954_v38 = vmul.f32 %v952_v20, %v1470_v16  ;;  %v955_v5 = vmul.f32 %v953_v22, %v1481_v31  ;;  %v969_v6 = vpop.permute.xlu1 %968 }
 0x2b0   : > { %v972_v33 = vsel %vm779_vm2, %v969_v6, %v971_v62  ;;  %v973_v36 = vsel %vm779_vm2, %v971_v62, %v969_v6  ;;  %v1017_v62 = vpop.permute.xlu0 %1016 }
 0x2b1   : > { %v956_v24 = vadd.f32 %v954_v38, %v940_v37  ;;  %v957_v28 = vadd.f32 %v955_v5, %v941_v25  ;;  %v978_v40 = vmul.f32 %v976_v4, %v972_v33  ;;  %v979_v46 = vmul.f32 %v976_v4, %v973_v36 }
 0x2b3   : > { %v987_v16 = vpop.permute.xlu1 %986  ;;  %v966_v32 = vadd.f32 %v964_v50, %v956_v24  ;;  %v967_v56 = vadd.f32 %v965_v51, %v957_v28  ;;  %v980_v58 = vmul.f32 %v978_v40, %v1427_v52  ;;  %v981_v4 = vmul.f32 %v979_v46, %v1431_v54 }
 0x2b4   : > { %v988_v31 = vsel %vm804_vm7, %v985_v55, %v987_v16  ;;  %v989_v47 = vsel %vm804_vm7, %v987_v16, %v985_v55 }
 0x2b5   : > { %v994_v53 = vmul.f32 %v992_v39, %v988_v31  ;;  %v995_v21 = vmul.f32 %v992_v39, %v989_v47  ;;  %v982_v27 = vadd.f32 %v980_v58, %v966_v32  ;;  %v983_v52 = vadd.f32 %v981_v4, %v967_v56 }
 0x2b7   : > { %v1003_v59 = vpop.permute.xlu1 %1002  ;;  %v996_v43 = vmul.f32 %v994_v53, %v1500_v57  ;;  %v997_v48 = vmul.f32 %v995_v21, %v1506_v0 }
 0x2b8   : > { %v1004_v60 = vsel %vm829_vm8, %v1001_v18, %v1003_v59  ;;  %v1005_v35 = vsel %vm829_vm8, %v1003_v59, %v1001_v18 }
 0x2b9   : > { %v1010_v61 = vmul.f32 %v1590_v42, %v1004_v60  ;;  %v1011_v39 = vmul.f32 %v1590_v42, %v1005_v35  ;;  %v998_v0 = vadd.f32 %v996_v43, %v982_v27  ;;  %v999_v2 = vadd.f32 %v997_v48, %v983_v52 }
 0x2bb   : > { %v1012_v54 = vmul.f32 %v1010_v61, %v1518_v10  ;;  %v1013_v23 = vmul.f32 %v1011_v39, %v1521_v13  ;;  %v1019_v34 = vpop.permute.xlu1 %1018 }
 0x2bc   : > { %v1020_v1 = vsel %vm854_vm9, %v1017_v62, %v1019_v34  ;;  %v1021_v57 = vsel %vm854_vm9, %v1019_v34, %v1017_v62 }
 0x2bd   : > { %v1026_v8 = vmul.f32 %v1592_v26, %v1020_v1  ;;  %v1027_v42 = vmul.f32 %v1592_v26, %v1021_v57  ;;  %v1014_v29 = vadd.f32 %v1012_v54, %v998_v0  ;;  %v1015_v9 = vadd.f32 %v1013_v23, %v999_v2 }
 0x2bf   : > { %v1028_v10 = vmul.f32 %v1539_v44, %v1026_v8  ;;  %v1029_v13 = vmul.f32 %v1544_v45, %v1027_v42 }
 0x2c1   : > { %v1030_v14 = vadd.f32 %v1028_v10, %v1014_v29  ;;  %v1031_v49 = vadd.f32 %v1029_v13, %v1015_v9 }
 0x2c3   : > { %v1032_v15 = vadd.f32 %v1030_v14, %v1346_v17  ;;  %v1033_v41 = vadd.f32 %v1031_v49, %v1353_v19 }
 0x2c5   : > { %v1034_v20 = vadd.f32 %v1032_v15, %v1287_v3  ;;  %v1035_v22 = vadd.f32 %v1033_v41, %v1301_v7 }
 0x2c7   : > { %v1038_v26 = vcombine.low %v1034_v20, %v1035_v22 }
 0x2c9   : > { %1040 = vst [vmem:[%s288_s12] sm:$0xff] %v1038_v26 }
 0x2ca PF: > { %s16_s21 = sadd.s32 1, %s1208_s21  }
 0x2cb   : > { %p13_p4 = scmp.ge.s32.totalorder %s16_s21, 4  }
 0x2cd   :  { %15 = sbr.rel (!%p13_p4) target bundleno = 1 (0x1), region = 80 }

</bundles_post_ra>
